<compile_context>
chip_gen: v7x
topology: tpu7x:2x2x1
jax: 0.10.0
libtpu: 0.0.40
codegen_flags: <defaults>
</compile_context>

<pallas_src>
import jax
import jax.numpy as jnp
from jax.experimental import pallas as pl
from jax.experimental.pallas import tpu as pltpu

_LN_EPS = 1e-5  # torch.nn.LayerNorm default eps


# ----------------------------- kernels --------------------------------------


def _layernorm(y, gamma, beta):
    mean = jnp.mean(y, axis=-1, keepdims=True)
    yc = y - mean
    var = jnp.mean(yc * yc, axis=-1, keepdims=True)
    inv = jax.lax.rsqrt(var + _LN_EPS)
    return yc * inv * gamma + beta


def _attn_path_kernel(x_ref, wv_ref, bv_ref, wo_ref, bo_ref, g_ref, b_ref,
                      o_ref):
    x = x_ref[...].astype(jnp.float32)
    # V projection (the only live projection under attn_type='none').
    v = jnp.dot(x, wv_ref[...].astype(jnp.float32),
                preferred_element_type=jnp.float32) + bv_ref[...].astype(jnp.float32)
    # NoneAttention: attention output == V; combine_heads(split_heads(V)) == V.
    att = jnp.dot(v, wo_ref[...].astype(jnp.float32),
                  preferred_element_type=jnp.float32) + bo_ref[...].astype(jnp.float32)
    y = x + att  # residual; dropout1 is identity (p = 0 / eval mode)
    o_ref[...] = _layernorm(
        y, g_ref[...].astype(jnp.float32), b_ref[...].astype(jnp.float32)
    ).astype(o_ref.dtype)


def _ffn_path_kernel(t_ref, w1_ref, b1_ref, w2_ref, b2_ref, g_ref, b_ref,
                     o_ref):
    t = t_ref[...].astype(jnp.float32)
    h = jnp.dot(t, w1_ref[...].astype(jnp.float32),
                preferred_element_type=jnp.float32) + b1_ref[...].astype(jnp.float32)
    # TODO(synk): PyTorch nn.GELU() default is the exact erf-based GELU; the
    # tanh approximation is used here (guaranteed Mosaic lowering via tanh).
    h = jax.nn.gelu(h, approximate=True)
    f = jnp.dot(h, w2_ref[...].astype(jnp.float32),
                preferred_element_type=jnp.float32) + b2_ref[...].astype(jnp.float32)
    y = t + f  # residual; dropout2 is identity (p = 0 / eval mode)
    o_ref[...] = _layernorm(
        y, g_ref[...].astype(jnp.float32), b_ref[...].astype(jnp.float32)
    ).astype(o_ref.dtype)


# --------------------------- tiling helpers ----------------------------------


def _round_up(x, m):
    return (x + m - 1) // m * m


def _sublane(dtype):
    # Native packed sublane count: 8 for 32-bit, 16 for bf16, 32 for int8/fp8.
    return {4: 8, 2: 16, 1: 32}.get(jnp.dtype(dtype).itemsize, 8)


def _vmem_capacity_bytes():
    try:
        return int(pltpu.get_tpu_info().vmem_capacity_bytes)
    except Exception:
        return 64 << 20  # conservative (v7x physical per-TC VMEM)


def _pick_row_tile(n_rows, row_bytes, dtype, resident_bytes):
    """Row tile aligned to the dtype's sublane packing, sized from the current
    generation's VMEM so 2x(in+out) pipeline buffers + resident weights fit
    with headroom, preferring >= 2 grid steps (v7x megacore sharding)."""
    sub = _sublane(dtype)
    vmem = _vmem_capacity_bytes()
    budget = max(vmem // 4 - resident_bytes, 4 * sub * row_bytes)
    rows = budget // (4 * max(row_bytes, 1))          # 2 bufs x (in + out)
    rows = max(sub, min((rows // sub) * sub, 2048))
    if n_rows > sub:                                   # allow >= 2 grid steps
        rows = min(rows, _round_up(pl.cdiv(n_rows, 2), sub))
    rows = min(rows, _round_up(n_rows, sub))
    return max(rows, sub)


def _fused_rows_call(kernel, x2d, weights, out_dim, flops_per_row,
                     transcendentals_per_row):
    """Row-tiled pallas_call: x2d [N, in_dim] -> [N, out_dim]; small weights
    stay resident as full VMEM blocks (constant index map)."""
    n_rows, in_dim = x2d.shape
    dtype = x2d.dtype
    itemsize = jnp.dtype(dtype).itemsize
    resident = int(sum(int(w.size) * w.dtype.itemsize for w in weights))
    row_bytes = max(in_dim, out_dim) * itemsize

    rows = _pick_row_tile(n_rows, row_bytes, dtype, resident)
    padded = _round_up(n_rows, rows)
    if padded != n_rows:
        # Per-row ops (matmul rows, residual, LayerNorm) are independent, so
        # zero-padded rows are harmless and sliced off afterwards.
        x2d = jnp.pad(x2d, ((0, padded - n_rows), (0, 0)))
    grid = (padded // rows,)

    in_specs = [pl.BlockSpec((rows, in_dim), lambda i: (i, 0))]
    in_specs += [pl.BlockSpec(tuple(w.shape), lambda i: (0, 0)) for w in weights]
    out_specs = pl.BlockSpec((rows, out_dim), lambda i: (i, 0))

    cost = pl.CostEstimate(
        flops=int(flops_per_row) * int(padded),
        transcendentals=int(transcendentals_per_row) * int(padded),
        bytes_accessed=int(padded * (in_dim + out_dim) * itemsize + resident),
    )

    out = pl.pallas_call(
        kernel,
        out_shape=jax.ShapeDtypeStruct((padded, out_dim), dtype),
        grid=grid,
        in_specs=in_specs,
        out_specs=out_specs,
        compiler_params=pltpu.CompilerParams(
            dimension_semantics=("parallel",),
            vmem_limit_bytes=min(_vmem_capacity_bytes() // 2, 128 * 1024 * 1024),
        ),
        cost_estimate=cost,
    )(x2d, *weights)
    return out[:n_rows]


# ----------------------------- Block forward ---------------------------------


def block_forward(X, mask, params):
    """Block.forward with attn_type='none' and dropout disabled.

    mask is accepted for interface parity; NoneAttention ignores it, so it is
    never handed to a kernel (no dead DMA)."""
    del mask
    B, S, dim = X.shape
    hd = params["W_v"].shape[1]
    hidden = params["W_1"].shape[1]
    x2 = X.reshape(B * S, dim)

    t1 = _fused_rows_call(
        _attn_path_kernel, x2,
        [params["W_v"], params["b_v"], params["W_o"], params["b_o"],
         params["gamma1"], params["beta1"]],
        out_dim=dim,
        flops_per_row=2 * dim * hd + 2 * hd * dim + 10 * dim,
        transcendentals_per_row=1,
    )

    out = _fused_rows_call(
        _ffn_path_kernel, t1,
        [params["W_1"], params["b_1"], params["W_2"], params["b_2"],
         params["gamma2"], params["beta2"]],
        out_dim=dim,
        flops_per_row=2 * dim * hidden + 2 * hidden * dim + 12 * hidden + 10 * dim,
        transcendentals_per_row=hidden + 1,
    )

    return out.reshape(B, S, dim)


# ------------------------------- test ----------------------------------------


if __name__ == "__main__":
    key = jax.random.PRNGKey(0)
    ks = jax.random.split(key, 14)

    B, S = 2, 8
    dim, num_head, head_dim, hidden_dim = 32, 4, 8, 64
    hd = num_head * head_dim

    def dense(k, fan_in, shape):
        return jax.random.normal(k, shape, jnp.float32) / jnp.sqrt(float(fan_in))

    params = {
        "W_v": dense(ks[0], dim, (dim, hd)),
        "b_v": 0.1 * jax.random.normal(ks[1], (1, hd), jnp.float32),
        "W_o": dense(ks[2], hd, (hd, dim)),
        "b_o": 0.1 * jax.random.normal(ks[3], (1, dim), jnp.float32),
        "gamma1": 1.0 + 0.1 * jax.random.normal(ks[4], (1, dim), jnp.float32),
        "beta1": 0.1 * jax.random.normal(ks[5], (1, dim), jnp.float32),
        "W_1": dense(ks[6], dim, (dim, hidden_dim)),
        "b_1": 0.1 * jax.random.normal(ks[7], (1, hidden_dim), jnp.float32),
        "W_2": dense(ks[8], hidden_dim, (hidden_dim, dim)),
        "b_2": 0.1 * jax.random.normal(ks[9], (1, dim), jnp.float32),
        "gamma2": 1.0 + 0.1 * jax.random.normal(ks[10], (1, dim), jnp.float32),
        "beta2": 0.1 * jax.random.normal(ks[11], (1, dim), jnp.float32),
    }

    X = jax.random.normal(ks[12], (B, S, dim), jnp.float32)
    mask = jnp.ones((B, S), jnp.float32)

    out = block_forward(X, mask, params)
    jax.block_until_ready(out)

    # Pure-JAX reference of Block.forward (attn_type='none', dropout off).
    def ln(y, g, b):
        m = jnp.mean(y, axis=-1, keepdims=True)
        v = jnp.mean((y - m) ** 2, axis=-1, keepdims=True)
        return (y - m) * jax.lax.rsqrt(v + _LN_EPS) * g + b

    V = X @ params["W_v"] + params["b_v"][0]
    att = V @ params["W_o"] + params["b_o"][0]
    t1_ref = ln(X + att, params["gamma1"][0], params["beta1"][0])
    h_ref = jax.nn.gelu(t1_ref @ params["W_1"] + params["b_1"][0], approximate=True)
    f_ref = h_ref @ params["W_2"] + params["b_2"][0]
    ref = ln(t1_ref + f_ref, params["gamma2"][0], params["beta2"][0])

    assert out.shape == ref.shape and out.dtype == ref.dtype
    assert bool(jnp.allclose(out, ref, atol=2e-2, rtol=2e-2)), float(
        jnp.max(jnp.abs(out - ref)))
    print("KERNEL_OK")
</pallas_src>

<mosaic_0001>
module attributes {stable_mosaic.version = 11 : i64} {
  func.func @_attn_path_kernel(%arg0: i32, %arg1: memref<8x32xf32, #tpu.memory_space<vmem>>, %arg2: memref<32x32xf32, #tpu.memory_space<vmem>>, %arg3: memref<1x32xf32, #tpu.memory_space<vmem>>, %arg4: memref<32x32xf32, #tpu.memory_space<vmem>>, %arg5: memref<1x32xf32, #tpu.memory_space<vmem>>, %arg6: memref<1x32xf32, #tpu.memory_space<vmem>>, %arg7: memref<1x32xf32, #tpu.memory_space<vmem>>, %arg8: memref<8x32xf32, #tpu.memory_space<vmem>>) attributes {dimension_semantics = [#tpu.dimension_semantics<parallel>], iteration_bounds = array<i64: 2>, scalar_prefetch = 0 : i64, scratch_operands = 0 : i64, tpu.core_type = #tpu.core_type<tc>, window_params = [{transform_indices = @transform_0, window_bounds = array<i64: 8, 32>}, {pipeline_mode = #tpu.pipeline_mode<synchronous>, transform_indices = @transform_1, window_bounds = array<i64: 32, 32>}, {pipeline_mode = #tpu.pipeline_mode<synchronous>, transform_indices = @transform_2, window_bounds = array<i64: 1, 32>}, {pipeline_mode = #tpu.pipeline_mode<synchronous>, transform_indices = @transform_3, window_bounds = array<i64: 32, 32>}, {pipeline_mode = #tpu.pipeline_mode<synchronous>, transform_indices = @transform_4, window_bounds = array<i64: 1, 32>}, {pipeline_mode = #tpu.pipeline_mode<synchronous>, transform_indices = @transform_5, window_bounds = array<i64: 1, 32>}, {pipeline_mode = #tpu.pipeline_mode<synchronous>, transform_indices = @transform_6, window_bounds = array<i64: 1, 32>}, {transform_indices = @transform_7, window_bounds = array<i64: 8, 32>}]} {
    %c0 = arith.constant 0 : index
    %c0_0 = arith.constant 0 : index
    %0 = vector.load %arg1[%c0, %c0_0] : memref<8x32xf32, #tpu.memory_space<vmem>>, vector<8x32xf32>
    %c0_1 = arith.constant 0 : index
    %c0_2 = arith.constant 0 : index
    %1 = vector.load %arg2[%c0_1, %c0_2] : memref<32x32xf32, #tpu.memory_space<vmem>>, vector<32x32xf32>
    %cst = arith.constant dense<0.000000e+00> : vector<8x32xf32>
    %2 = tpu.matmul %0, %1, %cst {dimension_numbers = #tpu.dot_dimension_numbers<[1], [0], [0], [1], [0, 0, 1, 1], [], []>} : vector<8x32xf32>, vector<32x32xf32>, vector<8x32xf32> -> vector<8x32xf32>
    %c0_3 = arith.constant 0 : index
    %c0_4 = arith.constant 0 : index
    %3 = vector.load %arg3[%c0_3, %c0_4] : memref<1x32xf32, #tpu.memory_space<vmem>>, vector<1x32xf32>
    %4 = vector.broadcast %3 : vector<1x32xf32> to vector<8x32xf32>
    %5 = arith.addf %2, %4 : vector<8x32xf32>
    %c0_5 = arith.constant 0 : index
    %c0_6 = arith.constant 0 : index
    %6 = vector.load %arg4[%c0_5, %c0_6] : memref<32x32xf32, #tpu.memory_space<vmem>>, vector<32x32xf32>
    %cst_7 = arith.constant dense<0.000000e+00> : vector<8x32xf32>
    %7 = tpu.matmul %5, %6, %cst_7 {dimension_numbers = #tpu.dot_dimension_numbers<[1], [0], [0], [1], [0, 0, 1, 1], [], []>} : vector<8x32xf32>, vector<32x32xf32>, vector<8x32xf32> -> vector<8x32xf32>
    %c0_8 = arith.constant 0 : index
    %c0_9 = arith.constant 0 : index
    %8 = vector.load %arg5[%c0_8, %c0_9] : memref<1x32xf32, #tpu.memory_space<vmem>>, vector<1x32xf32>
    %9 = vector.broadcast %8 : vector<1x32xf32> to vector<8x32xf32>
    %10 = arith.addf %7, %9 : vector<8x32xf32>
    %11 = arith.addf %0, %10 : vector<8x32xf32>
    %c0_10 = arith.constant 0 : index
    %c0_11 = arith.constant 0 : index
    %12 = vector.load %arg6[%c0_10, %c0_11] : memref<1x32xf32, #tpu.memory_space<vmem>>, vector<1x32xf32>
    %c0_12 = arith.constant 0 : index
    %c0_13 = arith.constant 0 : index
    %13 = vector.load %arg7[%c0_12, %c0_13] : memref<1x32xf32, #tpu.memory_space<vmem>>, vector<1x32xf32>
    %cst_14 = arith.constant dense<0.000000e+00> : vector<8xf32>
    %14 = vector.multi_reduction <add>, %11, %cst_14 [1] : vector<8x32xf32> to vector<8xf32>
    %15 = vector.shape_cast %14 : vector<8xf32> to vector<8x1xf32>
    %cst_15 = arith.constant 3.200000e+01 : f32
    %16 = vector.broadcast %cst_15 : f32 to vector<8x1xf32>
    %17 = arith.divf %15, %16 : vector<8x1xf32>
    %18 = vector.broadcast %17 : vector<8x1xf32> to vector<8x32xf32>
    %19 = arith.subf %11, %18 : vector<8x32xf32>
    %20 = arith.mulf %19, %19 : vector<8x32xf32>
    %cst_16 = arith.constant dense<0.000000e+00> : vector<8xf32>
    %21 = vector.multi_reduction <add>, %20, %cst_16 [1] : vector<8x32xf32> to vector<8xf32>
    %22 = vector.shape_cast %21 : vector<8xf32> to vector<8x1xf32>
    %cst_17 = arith.constant 3.200000e+01 : f32
    %23 = vector.broadcast %cst_17 : f32 to vector<8x1xf32>
    %24 = arith.divf %22, %23 : vector<8x1xf32>
    %cst_18 = arith.constant 9.99999974E-6 : f32
    %25 = vector.broadcast %cst_18 : f32 to vector<8x1xf32>
    %26 = arith.addf %24, %25 : vector<8x1xf32>
    %27 = math.rsqrt %26 : vector<8x1xf32>
    %28 = vector.broadcast %27 : vector<8x1xf32> to vector<8x32xf32>
    %29 = arith.mulf %19, %28 : vector<8x32xf32>
    %30 = vector.broadcast %12 : vector<1x32xf32> to vector<8x32xf32>
    %31 = arith.mulf %29, %30 : vector<8x32xf32>
    %32 = vector.broadcast %13 : vector<1x32xf32> to vector<8x32xf32>
    %33 = arith.addf %31, %32 : vector<8x32xf32>
    %c0_19 = arith.constant 0 : index
    %c0_20 = arith.constant 0 : index
    %34 = vector.load %arg8[%c0_19, %c0_20] : memref<8x32xf32, #tpu.memory_space<vmem>>, vector<8x32xf32>
    tpu.vector_store %arg8[%c0_19, %c0_20], %33 {strides = array<i32>} : memref<8x32xf32, #tpu.memory_space<vmem>>, vector<8x32xf32>,
    return
  }
  func.func @transform_0(%arg0: i32) -> (i32, i32) {
    %c0_i32 = arith.constant 0 : i32
    %c0_i32_0 = arith.constant 0 : i32
    return %arg0, %c0_i32 : i32, i32
  }
  func.func @transform_1(%arg0: i32) -> (i32, i32) {
    %c0_i32 = arith.constant 0 : i32
    %c0_i32_0 = arith.constant 0 : i32
    %c0_i32_1 = arith.constant 0 : i32
    return %c0_i32, %c0_i32_0 : i32, i32
  }
  func.func @transform_2(%arg0: i32) -> (i32, i32) {
    %c0_i32 = arith.constant 0 : i32
    %c0_i32_0 = arith.constant 0 : i32
    %c0_i32_1 = arith.constant 0 : i32
    return %c0_i32, %c0_i32_0 : i32, i32
  }
  func.func @transform_3(%arg0: i32) -> (i32, i32) {
    %c0_i32 = arith.constant 0 : i32
    %c0_i32_0 = arith.constant 0 : i32
    %c0_i32_1 = arith.constant 0 : i32
    return %c0_i32, %c0_i32_0 : i32, i32
  }
  func.func @transform_4(%arg0: i32) -> (i32, i32) {
    %c0_i32 = arith.constant 0 : i32
    %c0_i32_0 = arith.constant 0 : i32
    %c0_i32_1 = arith.constant 0 : i32
    return %c0_i32, %c0_i32_0 : i32, i32
  }
  func.func @transform_5(%arg0: i32) -> (i32, i32) {
    %c0_i32 = arith.constant 0 : i32
    %c0_i32_0 = arith.constant 0 : i32
    %c0_i32_1 = arith.constant 0 : i32
    return %c0_i32, %c0_i32_0 : i32, i32
  }
  func.func @transform_6(%arg0: i32) -> (i32, i32) {
    %c0_i32 = arith.constant 0 : i32
    %c0_i32_0 = arith.constant 0 : i32
    %c0_i32_1 = arith.constant 0 : i32
    return %c0_i32, %c0_i32_0 : i32, i32
  }
  func.func @transform_7(%arg0: i32) -> (i32, i32) {
    %c0_i32 = arith.constant 0 : i32
    %c0_i32_0 = arith.constant 0 : i32
    return %arg0, %c0_i32 : i32, i32
  }
}

</mosaic_0001>

<bundles_post_ra>
// kernel: tpu_custom_call.1
= control target key start
LH: loop header
LB: loop body
LE: loop exit
PB: predicated region body
PF: predicated region fallthrough
CT: control target
= control target key end

     0   :  { %12 = vsyncpa [#allocation3], 0  ;;  %s1225_s0 = inlined_call_operand.hbm [shape: f32[16,32], index: 0, kind: input, shape index: {}]   ;;  %s1226_s1 = inlined_call_operand.hbm [shape: f32[32,32], index: 1, kind: input, shape index: {}]   ;;  %s1227_s2 = inlined_call_operand.vmem [shape: f32[1,32], index: 2, kind: input, shape index: {}]   ;;  %s1228_s3 = inlined_call_operand.hbm [shape: f32[32,32], index: 3, kind: input, shape index: {}]   ;;  %s1229_s4 = inlined_call_operand.vmem [shape: f32[1,32], index: 4, kind: input, shape index: {}]   ;;  %s1230_s5 = inlined_call_operand.vmem [shape: f32[1,32], index: 5, kind: input, shape index: {}]   ;;  %s1231_s6 = inlined_call_operand.vmem [shape: f32[1,32], index: 6, kind: input, shape index: {}]   ;;  %s1232_s7 = inlined_call_operand.hbm [shape: f32[16,32], index: 7, kind: output, shape index: {}]  }
   0x1   :  { %14 = vsyncpa [#allocation3 + $0x1], 0 }
   0x2   :  { %15 = vsyncpa [#allocation6], 0 }
   0x3   :  { %16 = vsyncpa [#allocation4], 0 }
   0x4   :  { %18 = vsyncpa [#allocation4 + $0x1], 0  ;;  %s975_s24 = smov 0   ;;  %s977_s25 = smov 0  }
   0x5   :  { %s979_s26 = smov 0   ;;  %s981_s27 = smov 0  }
   0x6 LB: > { %s996_s28 = sadd.s32 4294967295, %s924_s27   ;;  %s628_s29 = sadd.s32 4294967294, %s924_s27   ;;  %s924_s27 = sphi %s981_s27, %s1252_s27   ;;  %s920_s26 = sphi %s979_s26, %s1251_s26   ;;  %s916_s25 = sphi %s977_s25, %s1250_s25   ;;  %s912_s24 = sphi %s975_s24, %s1249_s24  }
   0x7   : > { %p44_p0 = scmp.ne.s32.totalorder %s916_s25, %s912_s24  ;;  %p1233_p1 = scmp.eq.s32.totalorder %s996_s28, 0 }
   0x8   : > { %p200_p3 = scmp.eq.s32.totalorder %s628_s29, 1  ;;  %p629_p5 = scmp.ge.s32.totalorder %s924_s27, 1 }
   0x9   : > { %p1005_p4 = por %p1233_p1, %p44_p0  ;;  %p207_p7 = scmp.lt.s32.totalorder %s924_s27, 3 }
   0xa   : > { %p1010_p6 = por %p200_p3, %p44_p0  ;;  %s926_s10 = smov [#allocation5]  }
   0xb   : > { %s1236_s30 = scalar_select %p1005_p4, 1, 0 }
   0xc   : > { %s1237_s8 = scalar_select %p1010_p6, 1, 0 }
   0xd   : > { %p1015_p8 = pnand %p629_p5, %p207_p7  ;;  %s219_s11 = sshll.u32 %s926_s10, 4  ;;  %s1019_s11 = int_to_ptr.vmem [resolvable:$true] %s219_s11 }
   0xe   : > { %s927_s13 = smov [#allocation7]   ;;  %s768_s17 = scalar_lea.hbm %s1226_s1, 512 }
   0xf   : > { %p706_p9 = pneg %p1015_p8  ;;  %s235_s14 = sshll.u32 %s927_s13, 4  ;;  %s1030_s14 = int_to_ptr.vmem [resolvable:$true] %s235_s14 }
  0x10   : > { %p769_p12 = scmp.ne.s32.totalorder %s1226_s1, %s768_s17  ;;  %p775_p5 = scmp.lt.u32.totalorder %s768_s17, %s1226_s1 }
  0x11   : > { %p1026_p11 = pnand %p706_p9, %p1233_p1 }
  0x13   : > { %p770_p13 = pneg %p1026_p11 }
  0x15   : > { %p771_p0 = pnand %p770_p13, %p769_p12 }
  0x17   : > { %p772_p3 = pneg %p771_p0 }
  0x19   : > { %p777_p7 = pnand %p775_p5, %p772_p3 }
  0x1b   : > { %780 = shalt.err (!%p777_p7)
}
  0x1c   : > { %s781_s22 = scalar_lea.vmem %s1019_s11, 512  ;;  %p789_p2 = scmp.lt.s32.totalorder %s1019_s11, %s1019_s11 }
  0x1d   : > { %p782_p9 = scmp.ne.s32.totalorder %s1019_s11, %s781_s22  ;;  %p790_p12 = scmp.lt.s32.totalorder %s781_s22, %s781_s22 }
  0x1f   : > { %p784_p10 = pnand %p782_p9, %p770_p13  ;;  %p791_p0 = por %p790_p12, %p789_p2 }
  0x21   : > { %p785_p1 = pneg %p784_p10 }
  0x23   : > { %p792_p6 = pnand %p791_p0, %p785_p1 }
  0x25   : > { %795 = shalt.err (!%p792_p6)
}
  0x26   : > { %s928_s23 = smov 128   ;;  %s929_s29 = smov 8  }
  0x27   : > { %709 = dma.hbm_to_vmem [thread:$0]  (!%p1026_p11), %s1226_s1, 512, %s1019_s11, [#allocation6], %s928_s23, %s928_s23, %s929_s29  }
  0x28   : > { %s796_s17 = scalar_lea.hbm %s1228_s3, 512 }
  0x29   : > { %p797_p2 = scmp.ne.s32.totalorder %s1228_s3, %s796_s17  ;;  %p803_p10 = scmp.lt.u32.totalorder %s796_s17, %s1228_s3 }
  0x2b   : > { %p799_p1 = pnand %p797_p2, %p770_p13 }
  0x2d   : > { %p800_p6 = pneg %p799_p1 }
  0x2f   : > { %p805_p3 = pnand %p803_p10, %p800_p6 }
  0x31   : > { %808 = shalt.err (!%p805_p3)
}
  0x32   : > { %s809_s11 = scalar_lea.vmem %s1030_s14, 512  ;;  %p817_p12 = scmp.lt.s32.totalorder %s1030_s14, %s1030_s14 }
  0x33   : > { %p810_p5 = scmp.ne.s32.totalorder %s1030_s14, %s809_s11  ;;  %p818_p0 = scmp.lt.s32.totalorder %s809_s11, %s809_s11 }
  0x35   : > { %p812_p7 = pnand %p810_p5, %p770_p13  ;;  %p819_p2 = por %p818_p0, %p817_p12 }
  0x37   : > { %p813_p9 = pneg %p812_p7 }
  0x39   : > { %p820_p1 = pnand %p819_p2, %p813_p9 }
  0x3b   : > { %823 = shalt.err (!%p820_p1)
}
  0x3c   : > { %712 = dma.hbm_to_vmem [thread:$0]  (!%p1026_p11), %s1228_s3, 512, %s1030_s14, [#allocation6], %s928_s23, %s928_s23, %s929_s29  }
  0x3d   : > { %s1085_s13 = sadd.s32 1, %s924_s27   ;;  %s31_s12 = sadd.s32 1, %s920_s26 }
  0x3e   : > { %s28_s15 = ssub.s32 %s924_s27, %s1085_s13  ;;  %p38_p13 = scmp.ne.s32.totalorder %s920_s26, %s916_s25 }
  0x3f   : > { %p29_p6 = scmp.eq.s32.totalorder %s28_s15, 0  ;;  %p39_p10 = scmp.eq.s32.totalorder %s924_s27, 0 }
  0x40   : > { %p1240_p3 = scmp.eq.s32.totalorder %s996_s28, 1  ;;  %p723_p7 = scmp.lt.s32.totalorder %s924_s27, 2 }
  0x41   : > { %s1101_s17 = scalar_select %p29_p6, %s920_s26, %s31_s12  }
  0x42   : > { %p1095_p5 = por %p1240_p3, %p38_p13  ;;  %p40_p9 = por %p39_p10, %p38_p13 }
  0x43   : > { %s258_s18 = sand.u32 1, %s920_s26   ;;  %s634_s14 = sshll.u32 %s924_s27, 7 }
  0x44   : > { %s1241_s16 = scalar_select %p1095_p5, 1, 0 }
  0x45   : > { %s633_s19 = sshll.u32 %s258_s18, 3  ;;  %s1108_s20 = scalar_lea.hbm %s1225_s0, %s634_s14 }
  0x46   : > { %s262_s21 = scalar_lea.vmem [#allocation2], %s633_s19  ;;  %p1112_p11 = pnand %p723_p7, %p40_p9 }
  0x47   : > { %s269_s11 = sshll.u32 %s262_s21, 4  ;;  %s259_s10 = scalar_lea.sflag [#allocation3], %s258_s18  ;;  %s1110_s11 = int_to_ptr.vmem [resolvable:$true] %s269_s11 }
  0x48   : > { %s824_s12 = scalar_lea.hbm %s1108_s20, 128  ;;  %p826_p0 = pneg %p1112_p11 }
  0x49   : > { %p825_p12 = scmp.ne.s32.totalorder %s1108_s20, %s824_s12  ;;  %s829_s14 = scalar_lea.hbm %s1225_s0, 256 }
  0x4a   : > { %p830_p13 = scmp.lt.u32.totalorder %s1108_s20, %s1225_s0  ;;  %p831_p6 = scmp.lt.u32.totalorder %s829_s14, %s824_s12 }
  0x4b   : > { %p827_p2 = pnand %p826_p0, %p825_p12  ;;  %p833_p3 = scmp.lt.u32.totalorder %s824_s12, %s1108_s20 }
  0x4c   : > { %p832_p10 = por %p831_p6, %p830_p13 }
  0x4d   : > { %p828_p1 = pneg %p827_p2 }
  0x4e   : > { %p834_p7 = por %p833_p3, %p832_p10 }
  0x50   : > { %p835_p9 = pnand %p834_p7, %p828_p1 }
  0x52   : > { %838 = shalt.err (!%p835_p9)
}
  0x53   : > { %s839_s18 = scalar_lea.vmem %s1110_s11, 128  ;;  %s930_s21 = smov [#allocation2]  }
  0x54   : > { %p840_p12 = scmp.ne.s32.totalorder %s1110_s11, %s839_s18  ;;  %s844_s15 = sshll.u32 %s930_s21, 4  ;;  %s845_s15 = int_to_ptr.vmem [resolvable:$false] %s844_s15 }
  0x55   : > { %s846_s19 = scalar_lea.vmem %s845_s15, 256  ;;  %p847_p4 = scmp.lt.s32.totalorder %s1110_s11, %s845_s15 }
  0x56   : > { %p842_p2 = pnand %p840_p12, %p826_p0  ;;  %p848_p13 = scmp.lt.s32.totalorder %s846_s19, %s839_s18 }
  0x58   : > { %p843_p5 = pneg %p842_p2  ;;  %p849_p6 = por %p848_p13, %p847_p4 }
  0x5a   : > { %p850_p10 = pnand %p849_p6, %p843_p5 }
  0x5c   : > { %853 = shalt.err (!%p850_p10)
}
  0x5d   : > { %716 = dma.hbm_to_vmem [thread:$0]  (!%p1112_p11), %s1108_s20, 128, %s1110_s11, %s259_s10  }
  0x5e   : > { %278 = sbr.rel (%p1015_p8) target bundleno = 872 (0x368), region = 48  ;;  %s1144_s12 = sand.u32 (!%p1015_p8), 1, %s916_s25  }
  0x5f   : > { %s636_s14 = sshll.u32 (!%p1015_p8), %s1144_s12, 3  ;;  %s281_s23 = scalar_lea.sflag (!%p1015_p8), [#allocation3], %s1144_s12 }
  0x60   : > { %s284_s29 = scalar_lea.vmem (!%p1015_p8), [#allocation2], %s636_s14  ;;  %p1243_p4 = scmp.ne.s32.totalorder (!%p1015_p8), %s1236_s30, 0 }
  0x65   : > { %899 = dma.done.wait (%p1243_p4), %s281_s23, 128  }
  0x66   : > { %901 = vsyncadd (%p1243_p4), %s281_s23, 4294967168  ;;  %p1244_p5 = scmp.eq.s32.totalorder %s996_s28, 0 }
  0x68   : > { %903 = dma.done.wait (%p1244_p5), [#allocation6], 1024   ;;  %p1245_p8 = pmov %p1244_p5 }
  0x69   : > { %v931_v0 = vmov 0.0|0.0   ;;  %vm932_vm0 = vmmov 0   ;;  %v933_v1 = vmov 0.0   ;;  %v324_v2 = vld [vmem:[#allocation5] sm:$0xff]  ;;  %v325_v3 = vld [vmem:[#allocation5 + $0x8] sm:$0xff]  ;;  %v326_v4 = vld [vmem:[#allocation5 + $0x10] sm:$0xff] }
  0x6a   : > { %905 = vsyncadd (%p1245_p8), [#allocation6], 4294966272  ;;  %682 = vmatprep.subr.bf16.mxu0 %v931_v0  ;;  %668 = vmatprep.mubr.msk.f32.mxu0 %vm932_vm0, %v933_v1  ;;  %v683_v5 = vpack.c.bf16 %v325_v3, %v324_v2  ;;  %v327_v6 = vld [vmem:[#allocation5 + $0x18] sm:$0xff]  ;;  %v409_v7 = vld [vmem:[#allocation7] sm:$0xff]  ;;  %vm335_vm1 = vcmask 261120   ;;  %s647_s15 = sshll.u32 %s996_s28, 7 }
  0x6b   : > { %688 = vmatprep.subr.bf16.mxu1 %v931_v0  ;;  %679 = vmatprep.mubr.msk.f32.mxu1 %vm932_vm0, %v933_v1  ;;  %v410_v8 = vld [vmem:[#allocation7 + $0x8] sm:$0xff]  ;;  %v686_v9 = vpack.c.bf16 %v327_v6, %v326_v4  ;;  %v323_v11 = vld [vmem:[%s284_s29] sm:$0xff]  ;;  %s322_s19 = scalar_lea.vmem [#allocation8], %s636_s14  ;;  %s1180_s9 = scalar_lea.hbm %s1232_s7, %s647_s15 }
  0x6c   : > { %684 = vmatpush3.bf16.msra.mxu0 %v683_v5  ;;  %v689_v10 = vpack.c.bf16 %v410_v8, %v409_v7  ;;  %v411_v12 = vld [vmem:[#allocation7 + $0x10] sm:$0xff]  ;;  %v412_v13 = vld [vmem:[#allocation7 + $0x18] sm:$0xff]  ;;  %s539_s23 = sshll.u32 %s322_s19, 4  ;;  %s526_s20 = scalar_lea.sflag [#allocation4], %s1144_s12  ;;  %s1182_s23 = int_to_ptr.vmem [resolvable:$true] %s539_s23 }
  0x6d   : > { %685 = vmatprep.subr.bf16.mxu0 %v931_v0  ;;  %v692_v14 = vpack.c.bf16 %v412_v13, %v411_v12  ;;  %v640_v15 = vld [vmem:[%s1227_s2] ss:$0 sm:$0xff]  ;;  %s854_s11 = scalar_lea.vmem %s1182_s23, 128  ;;  %p1246_p0 = scmp.ne.s32.totalorder %s1241_s16, 0 }
  0x6e   : > { %690 = vmatpush3.bf16.msra.mxu1 %v689_v10  ;;  %v642_v19 = vld [vmem:[%s1229_s4] ss:$0 sm:$0xff]  ;;  %p855_p11 = scmp.ne.s32.totalorder %s1182_s23, %s854_s11  ;;  %s934_s28 = smov [#allocation8]  }
  0x6f   : > { %691 = vmatprep.subr.bf16.mxu1 %v931_v0  ;;  %v644_v34 = vld [vmem:[%s1230_s5] ss:$0 sm:$0xff]  ;;  %s858_s14 = sshll.u32 %s934_s28, 4  ;;  %s859_s14 = int_to_ptr.vmem [resolvable:$false] %s858_s14 }
  0x70   : > { %687 = vmatpush3.bf16.msra.mxu0 %v686_v9  ;;  %v645_v36 = vld [vmem:[%s1231_s6] ss:$0 sm:$0xff]  ;;  %p856_p1 = pnand %p855_p11, %p1246_p0  ;;  %s860_s22 = scalar_lea.vmem %s859_s14, 256 }
  0x71   : > { %p861_p7 = scmp.lt.s32.totalorder %s1182_s23, %s859_s14  ;;  %p862_p9 = scmp.lt.s32.totalorder %s860_s22, %s854_s11 }
  0x72   : > { %693 = vmatpush3.bf16.msra.mxu1 %v692_v14  ;;  %p857_p3 = pneg %p856_p1 }
  0x73   : > { %669 = vmatmul.mubr.msk.f32.vlgmr.msra.gmra.mrb[0].mxu0 %vm335_vm1, %v323_v11  ;;  %p863_p12 = por %p862_p9, %p861_p7 }
  0x75   : > { %p864_p2 = pnand %p863_p12, %p857_p3 }
 0x146   : > { %v405_v16 = vpop.f32.mrb[0].mxu0 }
 0x147   : > { %v406_v17 = vadd.f32 %v640_v15, %v405_v16  ;;  %v670_v18 = vpop.f32.mrb[1].mxu0 }
 0x149   : > { %680 = vmatmul.mubr.msk.f32.vlgmr.msra.gmra.mrb[0].mxu1 %vm335_vm1, %v406_v17 }
 0x21c   : > { %v489_v20 = vpop.f32.mrb[0].mxu1 }
 0x21d   : > { %v490_v21 = vadd.f32 %v642_v19, %v489_v20  ;;  %v681_v22 = vpop.f32.mrb[1].mxu1 }
 0x21f   : > { %v493_v23 = vadd.f32 %v490_v21, %v323_v11 }
 0x221   : > { %v496_v24 = vsel %vm335_vm1, %v493_v23, 0.0 }
 0x222   : > { %497 = vadd.xlane.f32.xlu0 %v496_v24 }
 0x2af   : > { %v498_v25 = vpop.xlane.xlu0 %497 }
 0x2b0   : > { %v500_v26 = vmul.f32 0.03125, %v498_v25 }
 0x2b2   : > { %v501_v27 = vsub.f32 %v493_v23, %v500_v26 }
 0x2b4   : > { %v502_v28 = vmul.f32 %v501_v27, %v501_v27 }
 0x2b6   : > { %v503_v29 = vsel %vm335_vm1, %v502_v28, 0.0 }
 0x2b7   : > { %504 = vadd.xlane.f32.xlu0 %v503_v29 }
 0x344   : > { %v505_v30 = vpop.xlane.xlu0 %504 }
 0x345   : > { %v506_v31 = vmul.f32 0.03125, %v505_v30 }
 0x347   : > { %v507_v32 = vadd.f32 1e-05, %v506_v31 }
 0x349   : > { %766 = vrsqrt.f32 %v507_v32 }
 0x353   : > { %v767_v33 = vpop.eup %766 }
 0x354   : > { %v509_v35 = vmul.f32 %v767_v33, %v501_v27 }
 0x356   : > { %v516_v37 = vmul.f32 %v644_v34, %v509_v35 }
 0x358   : > { %v523_v38 = vadd.f32 %v645_v36, %v516_v37 }
 0x35a   : > { %524 = vst.msk [vmem:[%s322_s19] sm:$0xff] %vm335_vm1, %v523_v38 }
 0x35b   : > { %867 = shalt.err (!%p864_p2)
}
 0x35c   : > { %s868_s12 = scalar_lea.hbm %s1180_s9, 128  ;;  %s872_s21 = scalar_lea.hbm %s1232_s7, 256 }
 0x35d   : > { %p869_p13 = scmp.ne.s32.totalorder %s1180_s9, %s868_s12  ;;  %p873_p4 = scmp.lt.u32.totalorder %s1180_s9, %s1232_s7 }
 0x35e   : > { %p874_p5 = scmp.lt.u32.totalorder %s872_s21, %s868_s12  ;;  %p876_p11 = scmp.lt.u32.totalorder %s868_s12, %s1180_s9 }
 0x35f   : > { %p870_p6 = pnand %p869_p13, %p1246_p0 }
 0x360   : > { %p875_p8 = por %p874_p5, %p873_p4 }
 0x361   : > { %p871_p10 = pneg %p870_p6 }
 0x362   : > { %p877_p1 = por %p876_p11, %p875_p8 }
 0x364   : > { %p878_p3 = pnand %p877_p1, %p871_p10 }
 0x366   : > { %881 = shalt.err (!%p878_p3)
}
 0x367   : > { %704 = dma.vmem_to_hbm [thread:$0]  (%p1246_p0), %s1182_s23, 128, %s1180_s9, %s526_s20  }
 0x368 PF: > { %s551_s29 = sand.u32 1, %s912_s24   ;;  %p1247_p7 = scmp.ne.s32.totalorder %s1237_s8, 0 }
 0x369   : > { %p1248_p9 = scmp.ge.s32.totalorder %s924_s27, 2  ;;  %s552_s30 = scalar_lea.sflag [#allocation4], %s551_s29 }
 0x36b   : > { %p718_p12 = pnand %p1248_p9, %p1247_p7 }
 0x36d   : > { %907 = dma.done.wait (!%p718_p12), %s552_s30, 128  }
 0x36e   : > { %909 = vsyncadd (!%p718_p12), %s552_s30, 4294967168  ;;  %p21_p2 = scmp.ge.s32.totalorder %s1085_s13, 4   ;;  %s1249_s24 = smov %s916_s25 }
 0x36f   : > { %s1250_s25 = smov %s920_s26  ;;  %s1251_s26 = smov %s1101_s17 }
 0x370   : > { %s1252_s27 = smov %s1085_s13  ;;  %23 = sbr.rel (!%p21_p2) target bundleno = 6 (0x6), region = 101 }
 0x377   :  { %557 = vsyncpa [#allocation3], 1 }
 0x378   :  { %559 = vsyncpa [#allocation3 + $0x1], 1 }
 0x379   :  { %560 = vsyncpa [#allocation6], 1 }
 0x37a   :  { %561 = vsyncpa [#allocation4], 1 }
 0x37b   :  { %563 = vsyncpa [#allocation4 + $0x1], 1 }

</bundles_post_ra>
